<compile_context>
chip_gen: v7x
topology: tpu7x:2x2x1
jax: 0.10.0
libtpu: 0.0.40
codegen_flags: <defaults>
</compile_context>

<pallas_src>
import numpy as np
import jax
import jax.numpy as jnp
from jax.experimental import pallas as pl
from jax.experimental.pallas import tpu as pltpu

_VMEM_LIMIT = 64 * 1024 * 1024  # explicit headroom (defaults are 16/32 MiB)
_ROW_CAP = 1024                 # target rows per matmul tile


# ---------------------------------------------------------------------------
# tile pickers (always return exact divisors -> no partial edge blocks)
# ---------------------------------------------------------------------------
def _pick_row_tile(m, cap=_ROW_CAP):
    if m <= cap:
        return m
    start = cap - cap % 8
    for t in range(start, 7, -8):
        if m % t == 0:
            return t
    return m


def _pick_th(h, w, cap_rows=_ROW_CAP):
    """Tile height (in image rows) for the fused top-down kernel."""
    if h * w <= cap_rows or h % 8 != 0:
        return h
    th = max(8, (min(h, max(cap_rows // w, 8)) // 8) * 8)
    while h % th != 0:
        th -= 8
    return th


def _pick_to(ho):
    if ho <= 8:
        return ho
    for cand in range(min(ho, 16), 0, -1):
        if ho % cand == 0:
            return cand
    return ho


# ---------------------------------------------------------------------------
# Pallas kernels
# ---------------------------------------------------------------------------
def _squeeze1x1_kernel(x_ref, w_ref, b_ref, o_ref):
    # x_ref: (tm, C) bf16, w_ref: (C, cout) bf16, b_ref: (1, cout) f32
    acc = jnp.dot(x_ref[...], w_ref[...], preferred_element_type=jnp.float32)
    o_ref[...] = (acc + b_ref[...]).astype(o_ref.dtype)


def _fused_squeeze_up_kernel(x_ref, w_ref, b_ref, ah_ref, aw_ref, prev_ref,
                             o_ref, pw_ref):
    """1x1 squeeze conv + separable bilinear x2 upsample of prev + add.

    x_ref   : (tm, C)          bf16  fine-level rows (tm = th * W)
    w_ref   : (C, cout)        bf16
    b_ref   : (1, cout)        f32
    ah_ref  : (th, Hc)         bf16  H-interp rows for this tile
    aw_ref  : (W, Wc)          bf16  W-interp operator
    prev_ref: (Hc, Wc, cout)   bf16  coarse level output (whole, this batch)
    o_ref   : (tm, cout)       bf16  single lane-dense store per tile
    pw_ref  : (Hc, W*cout)     bf16  VMEM scratch: W-interp of prev
    """
    hc = prev_ref.shape[0]
    tm, cout = o_ref.shape

    # Build the W-interp of the coarse level once per batch element.
    @pl.when(pl.program_id(1) == 0)
    def _():
        def body(p, carry):
            row = jnp.dot(aw_ref[...], prev_ref[p],
                          preferred_element_type=jnp.float32)       # (W, cout)
            pw_ref[pl.ds(p, 1), :] = row.astype(pw_ref.dtype).reshape(1, -1)
            return carry
        jax.lax.fori_loop(0, hc, body, 0)

    conv = jnp.dot(x_ref[...], w_ref[...],
                   preferred_element_type=jnp.float32)               # (tm, cout)
    up = jnp.dot(ah_ref[...], pw_ref[...],
                 preferred_element_type=jnp.float32)                 # (th, W*cout)
    o_ref[...] = (conv + up.reshape(tm, cout) + b_ref[...]).astype(o_ref.dtype)


def _down3x3s2_kernel(v00, v01, v10, v11, w_ref, b_ref, o_ref):
    """3x3 / stride-2 / pad-1 conv, tap-major (9 big-M matmuls, bias once).

    v{ry}{rx}: (Ho+1, Wo+1, C) bf16 H/W-parity views of the padded input.
    w_ref    : (9, C, cout)    bf16  (tap t = ky*3 + kx)
    b_ref    : (1, cout)       f32
    o_ref    : (to, Wo, cout)  f32
    """
    to, wo, cout = o_ref.shape
    c = v00.shape[-1]
    row0 = pl.program_id(1) * to
    views = (v00, v01, v10, v11)
    acc = jnp.zeros((to * wo, cout), jnp.float32)
    for ky in range(3):
        py, dy = ky % 2, ky // 2
        for kx in range(3):
            px, dx = kx % 2, kx // 2
            win = views[2 * py + px][pl.ds(row0 + dy, to), pl.ds(dx, wo), :]
            acc = acc + jnp.dot(win.reshape(to * wo, c), w_ref[ky * 3 + kx],
                                preferred_element_type=jnp.float32)
    o_ref[...] = (acc + b_ref[...]).reshape(to, wo, cout).astype(o_ref.dtype)


# ---------------------------------------------------------------------------
# Pallas wrappers
# ---------------------------------------------------------------------------
def squeeze1x1(x2d, w, b):
    """o = x2d @ w + b (bf16 out, f32 accumulation)."""
    m, c = x2d.shape
    cout = w.shape[1]
    tm = _pick_row_tile(m)
    return pl.pallas_call(
        _squeeze1x1_kernel,
        out_shape=jax.ShapeDtypeStruct((m, cout), jnp.bfloat16),
        grid=(m // tm,),
        in_specs=[
            pl.BlockSpec((tm, c), lambda i: (i, 0)),
            pl.BlockSpec((c, cout), lambda i: (0, 0)),
            pl.BlockSpec((1, cout), lambda i: (0, 0)),
        ],
        out_specs=pl.BlockSpec((tm, cout), lambda i: (i, 0)),
        compiler_params=pltpu.CompilerParams(
            dimension_semantics=("parallel",),
            vmem_limit_bytes=_VMEM_LIMIT),
    )(x2d, w, b.reshape(1, cout).astype(jnp.float32))


def squeeze_up_add(x3, prev4, w, b, ah, aw):
    """y[n] = x3[n] @ w + b + upsample2x(prev4[n])  (fused, bf16 out)."""
    n, hw, c = x3.shape
    _, hc, wc, cout = prev4.shape
    h, wd = ah.shape[0], aw.shape[0]
    assert hw == h * wd
    th = _pick_th(h, wd)
    tm = th * wd
    n_tiles = h // th
    return pl.pallas_call(
        _fused_squeeze_up_kernel,
        out_shape=jax.ShapeDtypeStruct((n, hw, cout), jnp.bfloat16),
        grid=(n, n_tiles),
        in_specs=[
            pl.BlockSpec((None, tm, c), lambda b_, i: (b_, i, 0)),
            pl.BlockSpec((c, cout), lambda b_, i: (0, 0)),
            pl.BlockSpec((1, cout), lambda b_, i: (0, 0)),
            pl.BlockSpec((th, hc), lambda b_, i: (i, 0)),
            pl.BlockSpec((wd, wc), lambda b_, i: (0, 0)),
            pl.BlockSpec((None, hc, wc, cout), lambda b_, i: (b_, 0, 0, 0)),
        ],
        out_specs=pl.BlockSpec((None, tm, cout), lambda b_, i: (b_, i, 0)),
        scratch_shapes=[pltpu.VMEM((hc, wd * cout), jnp.bfloat16)],
        compiler_params=pltpu.CompilerParams(
            dimension_semantics=("parallel", "arbitrary"),
            vmem_limit_bytes=_VMEM_LIMIT),
    )(x3, w, b.reshape(1, cout).astype(jnp.float32), ah, aw, prev4)


def down_conv3x3_s2(x_nhwc, w9, b):
    """3x3 / stride-2 / pad-1 conv (NHWC -> NHWC f32), tap-major Pallas kernel."""
    n, h, w, c = x_nhwc.shape
    cout = w9.shape[2]
    ho = (h - 1) // 2 + 1
    wo = (w - 1) // 2 + 1
    x = x_nhwc.astype(jnp.bfloat16)
    hp = 2 * ho + 2
    wp = 2 * wo + 2
    xpad = jnp.pad(x, ((0, 0), (1, hp - h - 1), (1, wp - w - 1), (0, 0)))
    views = [xpad[:, ry::2, rx::2, :] for ry in (0, 1) for rx in (0, 1)]
    hv, wv = views[0].shape[1], views[0].shape[2]          # Ho+1, Wo+1
    to = _pick_to(ho)
    view_spec = pl.BlockSpec((None, hv, wv, c), lambda b_, t: (b_, 0, 0, 0))
    return pl.pallas_call(
        _down3x3s2_kernel,
        out_shape=jax.ShapeDtypeStruct((n, ho, wo, cout), jnp.float32),
        grid=(n, ho // to),
        in_specs=[view_spec, view_spec, view_spec, view_spec,
                  pl.BlockSpec((9, c, cout), lambda b_, t: (0, 0, 0)),
                  pl.BlockSpec((1, cout), lambda b_, t: (0, 0))],
        out_specs=pl.BlockSpec((None, to, wo, cout), lambda b_, t: (b_, t, 0, 0)),
        compiler_params=pltpu.CompilerParams(
            dimension_semantics=("parallel", "parallel"),
            vmem_limit_bytes=_VMEM_LIMIT),
    )(*views, w9.astype(jnp.bfloat16), b.reshape(1, cout).astype(jnp.float32))


# ---------------------------------------------------------------------------
# Bilinear (align_corners=True) interpolation matrices, precomputed on host
# ---------------------------------------------------------------------------
def _interp_matrix_np(out_size, in_size):
    """Rows = F.interpolate(mode='bilinear', align_corners=True) weights."""
    if in_size == 1:
        return np.ones((out_size, 1), np.float32)
    src = np.arange(out_size, dtype=np.float64) * (in_size - 1) / (out_size - 1)
    lo = np.clip(np.floor(src).astype(np.int64), 0, in_size - 2)
    frac = (src - lo).astype(np.float32)
    a = np.zeros((out_size, in_size), np.float32)
    rows = np.arange(out_size)
    a[rows, lo] += 1.0 - frac
    a[rows, lo + 1] += frac
    return a


# ---------------------------------------------------------------------------
# FPN parameters + forward
# ---------------------------------------------------------------------------
def init_fpn_params(key, channels, cout=128, down=1):
    channels = list(channels)
    params = {"down": [], "squeeze": []}
    cin = channels[-1]
    for _ in range(down):
        key, kw, kb = jax.random.split(key, 3)
        w = jax.random.normal(kw, (cout, cin, 3, 3), jnp.float32) * 0.05
        b = jax.random.normal(kb, (cout,), jnp.float32) * 0.05
        # (cout, cin, 3, 3) -> (ky, kx, cin, cout) -> (9, cin, cout)
        w9 = jnp.transpose(w, (2, 3, 1, 0)).reshape(9, cin, cout)
        params["down"].append((w9, b))
        cin = cout
    for ch in reversed(channels):            # mimics channels.reverse()
        key, kw, kb = jax.random.split(key, 3)
        w = jax.random.normal(kw, (cout, ch, 1, 1), jnp.float32) * 0.05
        b = jax.random.normal(kb, (cout,), jnp.float32) * 0.05
        params["squeeze"].append((w.reshape(cout, ch).T, b))   # (ch, cout)
    return params


def fpn_forward(feature_maps_nchw, params):
    """FPN forward.  NCHW f32 at the module boundary, NHWC bf16 slabs inside."""
    # TODO(synk): in a full NHWC pipeline the boundary transposes would vanish.
    feats = [jnp.transpose(f, (0, 2, 3, 1)).astype(jnp.bfloat16)
             for f in feature_maps_nchw]                          # NHWC bf16

    # ----- downsample path: repeated 3x3 / stride-2 conv on the deepest map --
    feat_down = []
    x = feats[-1]
    for (w9, b) in params["down"]:
        y = down_conv3x3_s2(x, w9, b)                # (N, Ho, Wo, cout) f32
        feat_down.append(y)
        x = y.astype(jnp.bfloat16)

    # ----- top-down path: fused [1x1 squeeze + separable x2 upsample + add] --
    rev = feats[::-1]
    feat_up = []                                     # (y_flat bf16, H, W)
    for idx, (x, (w, b)) in enumerate(zip(rev, params["squeeze"])):
        n, h, wd, c = x.shape
        w_bf = w.astype(jnp.bfloat16)
        if idx == 0:
            y = squeeze1x1(x.reshape(n * h * wd, c), w_bf, b)
            y = y.reshape(n, h * wd, -1)
        else:
            prev, hc, wc = feat_up[-1]
            assert h == 2 * hc and wd == 2 * wc, \
                "adjacent FPN levels must differ by exactly 2x (module semantics)"
            cout = prev.shape[-1]
            ah = jnp.asarray(_interp_matrix_np(h, hc), jnp.bfloat16)
            aw = jnp.asarray(_interp_matrix_np(wd, wc), jnp.bfloat16)
            y = squeeze_up_add(x.reshape(n, h * wd, c),
                               prev.reshape(n, hc, wc, cout), w_bf, b, ah, aw)
        feat_up.append((y, h, wd))

    ups = []
    for (y, h, wd) in feat_up:
        n, cout = y.shape[0], y.shape[-1]
        # f32 cast fused into the single boundary transpose pass
        ups.append(jnp.transpose(y.reshape(n, h, wd, cout),
                                 (0, 3, 1, 2)).astype(jnp.float32))
    ups = ups[::-1]
    downs = [jnp.transpose(d, (0, 3, 1, 2)) for d in feat_down]
    return ups + downs                                               # NCHW f32


# ---------------------------------------------------------------------------
# Pure-JAX f32 reference (no Pallas) mirroring the PyTorch module
# ---------------------------------------------------------------------------
def _reference_fpn(feature_maps_nchw, params):
    feats = list(feature_maps_nchw)
    feat_down = []
    x = feats[-1]
    for (w9, b) in params["down"]:
        cin, cout = w9.shape[1], w9.shape[2]
        w4 = jnp.transpose(w9.reshape(3, 3, cin, cout), (3, 2, 0, 1))   # OIHW
        x = jax.lax.conv_general_dilated(
            x, w4, window_strides=(2, 2), padding=((1, 1), (1, 1)),
            dimension_numbers=("NCHW", "OIHW", "NCHW")) + b.reshape(1, -1, 1, 1)
        feat_down.append(x)
    rev = feats[::-1]
    feat_up = []
    for idx, (x, (w, b)) in enumerate(zip(rev, params["squeeze"])):
        y = jnp.einsum("nchw,cd->ndhw", x, w) + b.reshape(1, -1, 1, 1)
        if idx != 0:
            prev = feat_up[-1]
            hc, wc = prev.shape[2], prev.shape[3]
            ah = jnp.asarray(_interp_matrix_np(2 * hc, hc))
            aw = jnp.asarray(_interp_matrix_np(2 * wc, wc))
            y = y + jnp.einsum("hp,wq,ndpq->ndhw", ah, aw, prev)
        feat_up.append(y)
    return feat_up[::-1] + feat_down


if __name__ == "__main__":
    key = jax.random.PRNGKey(0)
    channels = [8, 16, 32]
    cout = 32
    down = 1

    k1, k2, k3, kp = jax.random.split(key, 4)
    feature_maps = [
        jax.random.normal(k1, (2, 8, 16, 16), jnp.float32),
        jax.random.normal(k2, (2, 16, 8, 8), jnp.float32),
        jax.random.normal(k3, (2, 32, 4, 4), jnp.float32),
    ]

    params = init_fpn_params(kp, channels, cout=cout, down=down)

    outs = fpn_forward(feature_maps, params)
    outs = [jax.block_until_ready(o) for o in outs]

    expected = [(2, cout, 16, 16), (2, cout, 8, 8), (2, cout, 4, 4), (2, cout, 2, 2)]
    assert [tuple(o.shape) for o in outs] == expected, [o.shape for o in outs]
    assert all(bool(jnp.all(jnp.isfinite(o))) for o in outs)

    # numerical check vs. pure-JAX f32 reference (Pallas path uses bf16 matmul
    # operands / bf16 level storage with f32 accumulation).
    refs = _reference_fpn(feature_maps, params)
    for o, r in zip(outs, refs):
        err = float(jnp.max(jnp.abs(o - jnp.asarray(r, jnp.float32))))
        assert err < 0.1, f"max abs error too large: {err}"

    print("KERNEL_OK")
</pallas_src>

<mosaic_0001>
module attributes {stable_mosaic.version = 11 : i64} {
  func.func @_down3x3s2_kernel(%arg0: i32, %arg1: i32, %arg2: memref<1x3x3x32xbf16, #tpu.memory_space<vmem>>, %arg3: memref<1x3x3x32xbf16, #tpu.memory_space<vmem>>, %arg4: memref<1x3x3x32xbf16, #tpu.memory_space<vmem>>, %arg5: memref<1x3x3x32xbf16, #tpu.memory_space<vmem>>, %arg6: memref<9x32x32xbf16, #tpu.memory_space<vmem>>, %arg7: memref<1x32xf32, #tpu.memory_space<vmem>>, %arg8: memref<1x2x2x32xf32, #tpu.memory_space<vmem>>) attributes {dimension_semantics = [#tpu.dimension_semantics<parallel>, #tpu.dimension_semantics<parallel>], iteration_bounds = array<i64: 2, 1>, scalar_prefetch = 0 : i64, scratch_operands = 0 : i64, tpu.core_type = #tpu.core_type<tc>, window_params = [{transform_indices = @transform_0, window_bounds = array<i64: 1, 3, 3, 32>}, {transform_indices = @transform_1, window_bounds = array<i64: 1, 3, 3, 32>}, {transform_indices = @transform_2, window_bounds = array<i64: 1, 3, 3, 32>}, {transform_indices = @transform_3, window_bounds = array<i64: 1, 3, 3, 32>}, {pipeline_mode = #tpu.pipeline_mode<synchronous>, transform_indices = @transform_4, window_bounds = array<i64: 9, 32, 32>}, {pipeline_mode = #tpu.pipeline_mode<synchronous>, transform_indices = @transform_5, window_bounds = array<i64: 1, 32>}, {transform_indices = @transform_6, window_bounds = array<i64: 1, 2, 2, 32>}]} {
    %c2_i32 = arith.constant 2 : i32
    %0 = arith.muli %arg1, %c2_i32 : i32
    %cst = arith.constant 0.000000e+00 : f32
    %1 = vector.broadcast %cst : f32 to vector<4x32xf32>
    %c0_i32 = arith.constant 0 : i32
    %2 = arith.addi %0, %c0_i32 : i32
    %c0 = arith.constant 0 : index
    %3 = arith.index_cast %2 : i32 to index
    %c0_0 = arith.constant 0 : index
    %c0_1 = arith.constant 0 : index
    %4 = vector.load %arg2[%c0, %3, %c0_0, %c0_1] : memref<1x3x3x32xbf16, #tpu.memory_space<vmem>>, vector<1x2x2x32xbf16>
    %5 = vector.shape_cast %4 : vector<1x2x2x32xbf16> to vector<2x2x32xbf16>
    %6 = vector.shape_cast %5 : vector<2x2x32xbf16> to vector<4x32xbf16>
    %c0_2 = arith.constant 0 : index
    %c0_3 = arith.constant 0 : index
    %c0_4 = arith.constant 0 : index
    %7 = vector.load %arg6[%c0_2, %c0_3, %c0_4] : memref<9x32x32xbf16, #tpu.memory_space<vmem>>, vector<1x32x32xbf16>
    %8 = vector.shape_cast %7 : vector<1x32x32xbf16> to vector<32x32xbf16>
    %cst_5 = arith.constant dense<0.000000e+00> : vector<4x32xf32>
    %9 = tpu.matmul %6, %8, %cst_5 {dimension_numbers = #tpu.dot_dimension_numbers<[1], [0], [0], [1], [0, 0, 1, 1], [], []>} : vector<4x32xbf16>, vector<32x32xbf16>, vector<4x32xf32> -> vector<4x32xf32>
    %10 = arith.addf %1, %9 : vector<4x32xf32>
    %c0_i32_6 = arith.constant 0 : i32
    %11 = arith.addi %0, %c0_i32_6 : i32
    %c0_7 = arith.constant 0 : index
    %12 = arith.index_cast %11 : i32 to index
    %c0_8 = arith.constant 0 : index
    %c0_9 = arith.constant 0 : index
    %13 = vector.load %arg3[%c0_7, %12, %c0_8, %c0_9] : memref<1x3x3x32xbf16, #tpu.memory_space<vmem>>, vector<1x2x2x32xbf16>
    %14 = vector.shape_cast %13 : vector<1x2x2x32xbf16> to vector<2x2x32xbf16>
    %15 = vector.shape_cast %14 : vector<2x2x32xbf16> to vector<4x32xbf16>
    %c1 = arith.constant 1 : index
    %c0_10 = arith.constant 0 : index
    %c0_11 = arith.constant 0 : index
    %16 = vector.load %arg6[%c1, %c0_10, %c0_11] : memref<9x32x32xbf16, #tpu.memory_space<vmem>>, vector<1x32x32xbf16>
    %17 = vector.shape_cast %16 : vector<1x32x32xbf16> to vector<32x32xbf16>
    %cst_12 = arith.constant dense<0.000000e+00> : vector<4x32xf32>
    %18 = tpu.matmul %15, %17, %cst_12 {dimension_numbers = #tpu.dot_dimension_numbers<[1], [0], [0], [1], [0, 0, 1, 1], [], []>} : vector<4x32xbf16>, vector<32x32xbf16>, vector<4x32xf32> -> vector<4x32xf32>
    %19 = arith.addf %10, %18 : vector<4x32xf32>
    %c0_i32_13 = arith.constant 0 : i32
    %20 = arith.addi %0, %c0_i32_13 : i32
    %c0_14 = arith.constant 0 : index
    %21 = arith.index_cast %20 : i32 to index
    %c1_15 = arith.constant 1 : index
    %c0_16 = arith.constant 0 : index
    %22 = vector.load %arg2[%c0_14, %21, %c1_15, %c0_16] : memref<1x3x3x32xbf16, #tpu.memory_space<vmem>>, vector<1x2x2x32xbf16>
    %23 = vector.shape_cast %22 : vector<1x2x2x32xbf16> to vector<2x2x32xbf16>
    %24 = vector.shape_cast %23 : vector<2x2x32xbf16> to vector<4x32xbf16>
    %c2 = arith.constant 2 : index
    %c0_17 = arith.constant 0 : index
    %c0_18 = arith.constant 0 : index
    %25 = vector.load %arg6[%c2, %c0_17, %c0_18] : memref<9x32x32xbf16, #tpu.memory_space<vmem>>, vector<1x32x32xbf16>
    %26 = vector.shape_cast %25 : vector<1x32x32xbf16> to vector<32x32xbf16>
    %cst_19 = arith.constant dense<0.000000e+00> : vector<4x32xf32>
    %27 = tpu.matmul %24, %26, %cst_19 {dimension_numbers = #tpu.dot_dimension_numbers<[1], [0], [0], [1], [0, 0, 1, 1], [], []>} : vector<4x32xbf16>, vector<32x32xbf16>, vector<4x32xf32> -> vector<4x32xf32>
    %28 = arith.addf %19, %27 : vector<4x32xf32>
    %c0_i32_20 = arith.constant 0 : i32
    %29 = arith.addi %0, %c0_i32_20 : i32
    %c0_21 = arith.constant 0 : index
    %30 = arith.index_cast %29 : i32 to index
    %c0_22 = arith.constant 0 : index
    %c0_23 = arith.constant 0 : index
    %31 = vector.load %arg4[%c0_21, %30, %c0_22, %c0_23] : memref<1x3x3x32xbf16, #tpu.memory_space<vmem>>, vector<1x2x2x32xbf16>
    %32 = vector.shape_cast %31 : vector<1x2x2x32xbf16> to vector<2x2x32xbf16>
    %33 = vector.shape_cast %32 : vector<2x2x32xbf16> to vector<4x32xbf16>
    %c3 = arith.constant 3 : index
    %c0_24 = arith.constant 0 : index
    %c0_25 = arith.constant 0 : index
    %34 = vector.load %arg6[%c3, %c0_24, %c0_25] : memref<9x32x32xbf16, #tpu.memory_space<vmem>>, vector<1x32x32xbf16>
    %35 = vector.shape_cast %34 : vector<1x32x32xbf16> to vector<32x32xbf16>
    %cst_26 = arith.constant dense<0.000000e+00> : vector<4x32xf32>
    %36 = tpu.matmul %33, %35, %cst_26 {dimension_numbers = #tpu.dot_dimension_numbers<[1], [0], [0], [1], [0, 0, 1, 1], [], []>} : vector<4x32xbf16>, vector<32x32xbf16>, vector<4x32xf32> -> vector<4x32xf32>
    %37 = arith.addf %28, %36 : vector<4x32xf32>
    %c0_i32_27 = arith.constant 0 : i32
    %38 = arith.addi %0, %c0_i32_27 : i32
    %c0_28 = arith.constant 0 : index
    %39 = arith.index_cast %38 : i32 to index
    %c0_29 = arith.constant 0 : index
    %c0_30 = arith.constant 0 : index
    %40 = vector.load %arg5[%c0_28, %39, %c0_29, %c0_30] : memref<1x3x3x32xbf16, #tpu.memory_space<vmem>>, vector<1x2x2x32xbf16>
    %41 = vector.shape_cast %40 : vector<1x2x2x32xbf16> to vector<2x2x32xbf16>
    %42 = vector.shape_cast %41 : vector<2x2x32xbf16> to vector<4x32xbf16>
    %c4 = arith.constant 4 : index
    %c0_31 = arith.constant 0 : index
    %c0_32 = arith.constant 0 : index
    %43 = vector.load %arg6[%c4, %c0_31, %c0_32] : memref<9x32x32xbf16, #tpu.memory_space<vmem>>, vector<1x32x32xbf16>
    %44 = vector.shape_cast %43 : vector<1x32x32xbf16> to vector<32x32xbf16>
    %cst_33 = arith.constant dense<0.000000e+00> : vector<4x32xf32>
    %45 = tpu.matmul %42, %44, %cst_33 {dimension_numbers = #tpu.dot_dimension_numbers<[1], [0], [0], [1], [0, 0, 1, 1], [], []>} : vector<4x32xbf16>, vector<32x32xbf16>, vector<4x32xf32> -> vector<4x32xf32>
    %46 = arith.addf %37, %45 : vector<4x32xf32>
    %c0_i32_34 = arith.constant 0 : i32
    %47 = arith.addi %0, %c0_i32_34 : i32
    %c0_35 = arith.constant 0 : index
    %48 = arith.index_cast %47 : i32 to index
    %c1_36 = arith.constant 1 : index
    %c0_37 = arith.constant 0 : index
    %49 = vector.load %arg4[%c0_35, %48, %c1_36, %c0_37] : memref<1x3x3x32xbf16, #tpu.memory_space<vmem>>, vector<1x2x2x32xbf16>
    %50 = vector.shape_cast %49 : vector<1x2x2x32xbf16> to vector<2x2x32xbf16>
    %51 = vector.shape_cast %50 : vector<2x2x32xbf16> to vector<4x32xbf16>
    %c5 = arith.constant 5 : index
    %c0_38 = arith.constant 0 : index
    %c0_39 = arith.constant 0 : index
    %52 = vector.load %arg6[%c5, %c0_38, %c0_39] : memref<9x32x32xbf16, #tpu.memory_space<vmem>>, vector<1x32x32xbf16>
    %53 = vector.shape_cast %52 : vector<1x32x32xbf16> to vector<32x32xbf16>
    %cst_40 = arith.constant dense<0.000000e+00> : vector<4x32xf32>
    %54 = tpu.matmul %51, %53, %cst_40 {dimension_numbers = #tpu.dot_dimension_numbers<[1], [0], [0], [1], [0, 0, 1, 1], [], []>} : vector<4x32xbf16>, vector<32x32xbf16>, vector<4x32xf32> -> vector<4x32xf32>
    %55 = arith.addf %46, %54 : vector<4x32xf32>
    %c1_i32 = arith.constant 1 : i32
    %56 = arith.addi %0, %c1_i32 : i32
    %c0_41 = arith.constant 0 : index
    %57 = arith.index_cast %56 : i32 to index
    %c0_42 = arith.constant 0 : index
    %c0_43 = arith.constant 0 : index
    %58 = vector.load %arg2[%c0_41, %57, %c0_42, %c0_43] : memref<1x3x3x32xbf16, #tpu.memory_space<vmem>>, vector<1x2x2x32xbf16>
    %59 = vector.shape_cast %58 : vector<1x2x2x32xbf16> to vector<2x2x32xbf16>
    %60 = vector.shape_cast %59 : vector<2x2x32xbf16> to vector<4x32xbf16>
    %c6 = arith.constant 6 : index
    %c0_44 = arith.constant 0 : index
    %c0_45 = arith.constant 0 : index
    %61 = vector.load %arg6[%c6, %c0_44, %c0_45] : memref<9x32x32xbf16, #tpu.memory_space<vmem>>, vector<1x32x32xbf16>
    %62 = vector.shape_cast %61 : vector<1x32x32xbf16> to vector<32x32xbf16>
    %cst_46 = arith.constant dense<0.000000e+00> : vector<4x32xf32>
    %63 = tpu.matmul %60, %62, %cst_46 {dimension_numbers = #tpu.dot_dimension_numbers<[1], [0], [0], [1], [0, 0, 1, 1], [], []>} : vector<4x32xbf16>, vector<32x32xbf16>, vector<4x32xf32> -> vector<4x32xf32>
    %64 = arith.addf %55, %63 : vector<4x32xf32>
    %c1_i32_47 = arith.constant 1 : i32
    %65 = arith.addi %0, %c1_i32_47 : i32
    %c0_48 = arith.constant 0 : index
    %66 = arith.index_cast %65 : i32 to index
    %c0_49 = arith.constant 0 : index
    %c0_50 = arith.constant 0 : index
    %67 = vector.load %arg3[%c0_48, %66, %c0_49, %c0_50] : memref<1x3x3x32xbf16, #tpu.memory_space<vmem>>, vector<1x2x2x32xbf16>
    %68 = vector.shape_cast %67 : vector<1x2x2x32xbf16> to vector<2x2x32xbf16>
    %69 = vector.shape_cast %68 : vector<2x2x32xbf16> to vector<4x32xbf16>
    %c7 = arith.constant 7 : index
    %c0_51 = arith.constant 0 : index
    %c0_52 = arith.constant 0 : index
    %70 = vector.load %arg6[%c7, %c0_51, %c0_52] : memref<9x32x32xbf16, #tpu.memory_space<vmem>>, vector<1x32x32xbf16>
    %71 = vector.shape_cast %70 : vector<1x32x32xbf16> to vector<32x32xbf16>
    %cst_53 = arith.constant dense<0.000000e+00> : vector<4x32xf32>
    %72 = tpu.matmul %69, %71, %cst_53 {dimension_numbers = #tpu.dot_dimension_numbers<[1], [0], [0], [1], [0, 0, 1, 1], [], []>} : vector<4x32xbf16>, vector<32x32xbf16>, vector<4x32xf32> -> vector<4x32xf32>
    %73 = arith.addf %64, %72 : vector<4x32xf32>
    %c1_i32_54 = arith.constant 1 : i32
    %74 = arith.addi %0, %c1_i32_54 : i32
    %c0_55 = arith.constant 0 : index
    %75 = arith.index_cast %74 : i32 to index
    %c1_56 = arith.constant 1 : index
    %c0_57 = arith.constant 0 : index
    %76 = vector.load %arg2[%c0_55, %75, %c1_56, %c0_57] : memref<1x3x3x32xbf16, #tpu.memory_space<vmem>>, vector<1x2x2x32xbf16>
    %77 = vector.shape_cast %76 : vector<1x2x2x32xbf16> to vector<2x2x32xbf16>
    %78 = vector.shape_cast %77 : vector<2x2x32xbf16> to vector<4x32xbf16>
    %c8 = arith.constant 8 : index
    %c0_58 = arith.constant 0 : index
    %c0_59 = arith.constant 0 : index
    %79 = vector.load %arg6[%c8, %c0_58, %c0_59] : memref<9x32x32xbf16, #tpu.memory_space<vmem>>, vector<1x32x32xbf16>
    %80 = vector.shape_cast %79 : vector<1x32x32xbf16> to vector<32x32xbf16>
    %cst_60 = arith.constant dense<0.000000e+00> : vector<4x32xf32>
    %81 = tpu.matmul %78, %80, %cst_60 {dimension_numbers = #tpu.dot_dimension_numbers<[1], [0], [0], [1], [0, 0, 1, 1], [], []>} : vector<4x32xbf16>, vector<32x32xbf16>, vector<4x32xf32> -> vector<4x32xf32>
    %82 = arith.addf %73, %81 : vector<4x32xf32>
    %c0_61 = arith.constant 0 : index
    %c0_62 = arith.constant 0 : index
    %83 = vector.load %arg7[%c0_61, %c0_62] : memref<1x32xf32, #tpu.memory_space<vmem>>, vector<1x32xf32>
    %84 = vector.broadcast %83 : vector<1x32xf32> to vector<4x32xf32>
    %85 = arith.addf %82, %84 : vector<4x32xf32>
    %86 = vector.shape_cast %85 : vector<4x32xf32> to vector<2x2x32xf32>
    %c0_63 = arith.constant 0 : index
    %c0_64 = arith.constant 0 : index
    %c0_65 = arith.constant 0 : index
    %c0_66 = arith.constant 0 : index
    %87 = vector.load %arg8[%c0_63, %c0_64, %c0_65, %c0_66] : memref<1x2x2x32xf32, #tpu.memory_space<vmem>>, vector<1x2x2x32xf32>
    %88 = vector.shape_cast %87 : vector<1x2x2x32xf32> to vector<2x2x32xf32>
    %89 = vector.shape_cast %86 : vector<2x2x32xf32> to vector<1x2x2x32xf32>
    tpu.vector_store %arg8[%c0_63, %c0_64, %c0_65, %c0_66], %89 {strides = array<i32>} : memref<1x2x2x32xf32, #tpu.memory_space<vmem>>, vector<1x2x2x32xf32>,
    return
  }
  func.func @transform_0(%arg0: i32, %arg1: i32) -> (i32, i32, i32, i32) {
    %c0_i32 = arith.constant 0 : i32
    %c0_i32_0 = arith.constant 0 : i32
    %c0_i32_1 = arith.constant 0 : i32
    %c0_i32_2 = arith.constant 0 : i32
    return %arg0, %c0_i32, %c0_i32_0, %c0_i32_1 : i32, i32, i32, i32
  }
  func.func @transform_1(%arg0: i32, %arg1: i32) -> (i32, i32, i32, i32) {
    %c0_i32 = arith.constant 0 : i32
    %c0_i32_0 = arith.constant 0 : i32
    %c0_i32_1 = arith.constant 0 : i32
    %c0_i32_2 = arith.constant 0 : i32
    return %arg0, %c0_i32, %c0_i32_0, %c0_i32_1 : i32, i32, i32, i32
  }
  func.func @transform_2(%arg0: i32, %arg1: i32) -> (i32, i32, i32, i32) {
    %c0_i32 = arith.constant 0 : i32
    %c0_i32_0 = arith.constant 0 : i32
    %c0_i32_1 = arith.constant 0 : i32
    %c0_i32_2 = arith.constant 0 : i32
    return %arg0, %c0_i32, %c0_i32_0, %c0_i32_1 : i32, i32, i32, i32
  }
  func.func @transform_3(%arg0: i32, %arg1: i32) -> (i32, i32, i32, i32) {
    %c0_i32 = arith.constant 0 : i32
    %c0_i32_0 = arith.constant 0 : i32
    %c0_i32_1 = arith.constant 0 : i32
    %c0_i32_2 = arith.constant 0 : i32
    return %arg0, %c0_i32, %c0_i32_0, %c0_i32_1 : i32, i32, i32, i32
  }
  func.func @transform_4(%arg0: i32, %arg1: i32) -> (i32, i32, i32) {
    %c0_i32 = arith.constant 0 : i32
    %c0_i32_0 = arith.constant 0 : i32
    %c0_i32_1 = arith.constant 0 : i32
    %c0_i32_2 = arith.constant 0 : i32
    return %c0_i32, %c0_i32_0, %c0_i32_1 : i32, i32, i32
  }
  func.func @transform_5(%arg0: i32, %arg1: i32) -> (i32, i32) {
    %c0_i32 = arith.constant 0 : i32
    %c0_i32_0 = arith.constant 0 : i32
    %c0_i32_1 = arith.constant 0 : i32
    return %c0_i32, %c0_i32_0 : i32, i32
  }
  func.func @transform_6(%arg0: i32, %arg1: i32) -> (i32, i32, i32, i32) {
    %c0_i32 = arith.constant 0 : i32
    %c0_i32_0 = arith.constant 0 : i32
    %c0_i32_1 = arith.constant 0 : i32
    return %arg0, %arg1, %c0_i32, %c0_i32_0 : i32, i32, i32, i32
  }
}

</mosaic_0001>

<bundles_post_ra>
// kernel: tpu_custom_call.1
= control target key start
LH: loop header
LB: loop body
LE: loop exit
PB: predicated region body
PF: predicated region fallthrough
CT: control target
= control target key end

     0   :  { %s2652_s0 = inlined_call_operand.hbm [shape: bf16[2,3,3,32], index: 0, kind: input, shape index: {}]   ;;  %s2653_s1 = inlined_call_operand.hbm [shape: bf16[2,3,3,32], index: 1, kind: input, shape index: {}]   ;;  %s2654_s2 = inlined_call_operand.hbm [shape: bf16[2,3,3,32], index: 2, kind: input, shape index: {}]   ;;  %s2655_s3 = inlined_call_operand.hbm [shape: bf16[2,3,3,32], index: 3, kind: input, shape index: {}]   ;;  %s2656_s4 = inlined_call_operand.hbm [shape: bf16[9,32,32], index: 4, kind: input, shape index: {}]   ;;  %s2657_s5 = inlined_call_operand.hbm [shape: f32[1,32], index: 5, kind: input, shape index: {}]   ;;  %s2658_s6 = inlined_call_operand.hbm [shape: f32[2,2,2,32], index: 6, kind: output, shape index: {}]  }
   0x1   :  { %2677 = sst [smem:[#allocation25_spill]] %s2653_s1 }
   0x2   :  { %2678 = sst [smem:[#allocation26_spill]] %s2656_s4 }
   0x3   :  { %2679 = sst [smem:[#allocation27_spill]] %s2658_s6 }
   0x4   :  { %11 = vsyncpa [#allocation3], 0 }
   0x5   :  { %13 = vsyncpa [#allocation3 + $0x1], 0 }
   0x6   :  { %14 = vsyncpa [#allocation6], 0 }
   0x7   :  { %16 = vsyncpa [#allocation6 + $0x1], 0 }
   0x8   :  { %17 = vsyncpa [#allocation9], 0 }
   0x9   :  { %19 = vsyncpa [#allocation9 + $0x1], 0 }
   0xa   :  { %20 = vsyncpa [#allocation12], 0 }
   0xb   :  { %21 = vsyncpa [#allocation4], 0 }
   0xc   :  { %23 = vsyncpa [#allocation4 + $0x1], 0  ;;  %s2130_s21 = smov 0   ;;  %s2132_s22 = smov 0  }
   0xd   :  { %s2134_s23 = smov 0   ;;  %s2136_s24 = smov 0  }
   0xe   :  { %s2138_s25 = smov 0   ;;  %s2140_s26 = smov 0  }
   0xf LB: > { %2680 = sst [smem:[#allocation20_spill]] %s2056_s21  ;;  %s2161_s27 = sadd.s32 4294967295, %s2076_s26   ;;  %s2076_s26 = sphi %s2140_s26, %s29_s26   ;;  %s2072_s25 = sphi %s2138_s25, %s2724_s25   ;;  %s2068_s24 = sphi %s2136_s24, %s2723_s24   ;;  %s2064_s23 = sphi %s2134_s23, %s2727_s23   ;;  %s2060_s22 = sphi %s2132_s22, %s2726_s22   ;;  %s2056_s21 = sphi %s2130_s21, %s2725_s21  }
  0x10   : > { %2681 = sst [smem:[#allocation21_spill]] %s2072_s25  ;;  %s1503_s28 = sadd.s32 4294967294, %s2076_s26  }
  0x11   : > { %p55_p0 = scmp.ne.s32.totalorder %s2064_s23, %s2060_s22  ;;  %p56_p1 = scmp.eq.s32.totalorder %s2076_s26, 0 }
  0x12   : > { %p61_p2 = scmp.ne.s32.totalorder %s2060_s22, %s2056_s21  ;;  %p2659_p3 = scmp.eq.s32.totalorder %s2161_s27, 0 }
  0x13   : > { %p207_p4 = scmp.eq.s32.totalorder %s2161_s27, 1  ;;  %p2172_p5 = por %p56_p1, %p55_p0 }
  0x14   : > { %p213_p6 = scmp.eq.s32.totalorder %s1503_s28, 1  ;;  %p2178_p7 = por %p2659_p3, %p61_p2 }
  0x15   : > { %p2182_p8 = por %p207_p4, %p55_p0  ;;  %p1504_p10 = scmp.ge.s32.totalorder %s2076_s26, 1 }
  0x16   : > { %s2683_s7 = scalar_select %p2178_p7, 1, 0 }
  0x17   : > { %s2684_s8 = scalar_select %p2182_p8, 1, 0 }
  0x18   : > { %p2186_p9 = por %p213_p6, %p61_p2  ;;  %p220_p11 = scmp.lt.s32.totalorder %s2076_s26, 3 }
  0x19   : > { %s2078_s11 = smov [#allocation10]   ;;  %s41_s14 = sadd.s32 1, %s2072_s25 }
  0x1a   : > { %s2685_s9 = scalar_select %p2186_p9, 1, 0 }
  0x1b   : > { %p2192_p12 = pnand %p1504_p10, %p220_p11  ;;  %s232_s12 = sshll.u32 %s2078_s11, 4  ;;  %s2196_s12 = int_to_ptr.vmem [resolvable:$true] %s232_s12 }
  0x1c   : > { %2686 = sst [smem:[#allocation22_spill]] %s2685_s9  ;;  %s2664_s15 = sand.u32 1, %s2064_s23  }
  0x1d   : > { %s2687_s10 = scalar_select %p2192_p12, 1, 0 }
  0x1e   : > { %p1694_p13 = pneg %p2192_p12  ;;  %p2210_p4 = scmp.ge.s32.totalorder %s41_s14, 2 }
  0x1f   : > { %s2690_s4 = sld [smem:[#allocation26_spill]] }
  0x20   : > { %p2204_p2 = pnand %p1694_p13, %p2659_p3 }
  0x22   : > { %s2688_s13 = scalar_select %p2204_p2, 1, 0 }
  0x23   : > { %p2668_p10 = pneg %p2204_p2 }
  0x25   : > { %s1802_s19 = scalar_lea.hbm %s2690_s4, 2304 }
  0x26   : > { %p1803_p6 = scmp.ne.s32.totalorder %s2690_s4, %s1802_s19  ;;  %p1809_p0 = scmp.lt.u32.totalorder %s1802_s19, %s2690_s4 }
  0x28   : > { %p1805_p11 = pnand %p2668_p10, %p1803_p6 }
  0x2a   : > { %p1806_p13 = pneg %p1805_p11 }
  0x2c   : > { %p1811_p3 = pnand %p1809_p0, %p1806_p13 }
  0x2e   : > { %1814 = shalt.err (!%p1811_p3)
}
  0x2f   : > { %s1815_s17 = scalar_lea.vmem %s2196_s12, 2304  ;;  %p1823_p7 = scmp.lt.s32.totalorder %s2196_s12, %s2196_s12 }
  0x30   : > { %p1816_p1 = scmp.ne.s32.totalorder %s2196_s12, %s1815_s17  ;;  %p1824_p6 = scmp.lt.s32.totalorder %s1815_s17, %s1815_s17 }
  0x32   : > { %p1818_p9 = pnand %p1816_p1, %p2668_p10  ;;  %p1825_p11 = por %p1824_p6, %p1823_p7 }
  0x34   : > { %p1819_p8 = pneg %p1818_p9 }
  0x36   : > { %p1826_p12 = pnand %p1825_p11, %p1819_p8 }
  0x38   : > { %1829 = shalt.err (!%p1826_p12)
}
  0x39   : > { %s2079_s29 = smov 64   ;;  %s2080_s18 = smov 4  }
  0x3a   : > { %1697 = dma.hbm_to_vmem [thread:$0]  (!%p2204_p2), %s2690_s4, 2304, %s2196_s12, [#allocation9], %s2079_s29, %s2079_s29, %s2080_s18  }
  0x3b   : > { %s2729_s14 = smov (%p2210_p4, %s41_s14), 0  ;;  %s2247_s28 = smul.u32 6, %s2664_s15 }
  0x3c   : > { %2691 = sst [smem:[#allocation23_spill]] %s2729_s14  ;;  %p2692_p3 = scmp.lt.s32.totalorder %s2076_s26, 2 }
  0x3d   : > { %s45_s17 = ssub.s32 %s2072_s25, %s2729_s14  ;;  %s2260_s9 = smul.u32 96, %s2072_s25 }
  0x3e   : > { %p2253_p7 = pnand %p2692_p3, %p2172_p5  ;;  %p46_p8 = scmp.eq.s32.totalorder %s45_s17, 0 }
  0x3f   : > { %s2694_s12 = sadd.s32 1, %s2064_s23  ;;  %s2667_s29 = sand.u32 1, %s2076_s26  }
  0x40   : > { %s2693_s11 = scalar_select %p2253_p7, 1, 0 }
  0x41   : > { %s2265_s16 = scalar_select %p46_p8, %s2064_s23, %s2694_s12  }
  0x42   : > { %s2696_s1 = sld [smem:[#allocation25_spill]]  ;;  %s282_s20 = scalar_lea.vmem [#allocation5], %s2247_s28 }
  0x43   : > { %2695 = sst [smem:[#allocation24_spill]] %s2265_s16  ;;  %s289_s15 = sshll.u32 %s282_s20, 4  ;;  %s2275_s15 = int_to_ptr.vmem [resolvable:$true] %s289_s15 }
  0x44   : > { %s2279_s4 = scalar_lea.sflag [#allocation6], %s2667_s29  ;;  %p2285_p9 = pneg %p2253_p7 }
  0x46   : > { %s2697_s12 = scalar_select %p2285_p9, 1, 0 }
  0x48   : > { %s2272_s30 = scalar_lea.hbm %s2696_s1, %s2260_s9  ;;  %s1835_s20 = scalar_lea.hbm %s2696_s1, 192 }
  0x49   : > { %s1830_s17 = scalar_lea.hbm %s2272_s30, 96  ;;  %p1836_p1 = scmp.lt.u32.totalorder %s2272_s30, %s2696_s1 }
  0x4a   : > { %p1831_p5 = scmp.ne.s32.totalorder %s2272_s30, %s1830_s17  ;;  %p1837_p4 = scmp.lt.u32.totalorder %s1835_s20, %s1830_s17 }
  0x4b   : > { %p1839_p6 = scmp.lt.u32.totalorder %s1830_s17, %s2272_s30 }
  0x4c   : > { %p1833_p12 = pnand %p2285_p9, %p1831_p5  ;;  %p1838_p13 = por %p1837_p4, %p1836_p1 }
  0x4e   : > { %p1834_p0 = pneg %p1833_p12  ;;  %p1840_p11 = por %p1839_p6, %p1838_p13 }
  0x50   : > { %p1841_p3 = pnand %p1840_p11, %p1834_p0 }
  0x52   : > { %1844 = shalt.err (!%p1841_p3)
}
  0x53   : > { %s1845_s29 = scalar_lea.vmem %s2275_s15, 96  ;;  %s2081_s18 = smov [#allocation5]  }
  0x54   : > { %p1846_p8 = scmp.ne.s32.totalorder %s2275_s15, %s1845_s29  ;;  %s1850_s19 = sshll.u32 %s2081_s18, 4  ;;  %s1851_s19 = int_to_ptr.vmem [resolvable:$false] %s1850_s19 }
  0x55   : > { %s1852_s25 = scalar_lea.vmem %s1851_s19, 192  ;;  %p1853_p10 = scmp.lt.s32.totalorder %s2275_s15, %s1851_s19 }
  0x56   : > { %p1848_p5 = pnand %p1846_p8, %p2285_p9  ;;  %p1854_p2 = scmp.lt.s32.totalorder %s1852_s25, %s1845_s29 }
  0x58   : > { %p1849_p12 = pneg %p1848_p5  ;;  %p1855_p1 = por %p1854_p2, %p1853_p10 }
  0x5a   : > { %p1856_p4 = pnand %p1855_p1, %p1849_p12 }
  0x5c   : > { %1859 = shalt.err (!%p1856_p4)
}
  0x5d   : > { %s2082_s14 = smov 32   ;;  %s2083_s17 = smov 2  }
  0x5e   : > { %1707 = dma.hbm_to_vmem [thread:$0]  (!%p2253_p7), %s2272_s30, 96, %s2275_s15, %s2279_s4, %s2082_s14, %s2082_s14, %s2083_s17  }
  0x5f   : > { %s2084_s20 = smov [#allocation11]   ;;  %s1860_s25 = scalar_lea.hbm %s2657_s5, 16 }
  0x60   : > { %s246_s18 = sshll.u32 %s2084_s20, 4  ;;  %p1861_p2 = scmp.ne.s32.totalorder %s2657_s5, %s1860_s25  ;;  %s247_s18 = int_to_ptr.vmem [resolvable:$true] %s246_s18 }
  0x61   : > { %p2698_p10 = scmp.ne.s32.totalorder %s2688_s13, 0  ;;  %p1867_p11 = scmp.lt.u32.totalorder %s1860_s25, %s2657_s5 }
  0x63   : > { %p2699_p0 = pneg %p2698_p10 }
  0x65   : > { %p1863_p13 = pnand %p1861_p2, %p2699_p0 }
  0x67   : > { %p1864_p6 = pneg %p1863_p13 }
  0x69   : > { %p1869_p3 = pnand %p1867_p11, %p1864_p6 }
  0x6b   : > { %1872 = shalt.err (!%p1869_p3)
}
  0x6c   : > { %s1873_s15 = scalar_lea.vmem %s247_s18, 16  ;;  %p2700_p5 = pmov %p2699_p0 }
  0x6d   : > { %p1874_p8 = scmp.ne.s32.totalorder %s247_s18, %s1873_s15  ;;  %s1880_s30 = scalar_lea.vmem %s247_s18, 32 }
  0x6e   : > { %p1881_p4 = scmp.lt.s32.totalorder %s247_s18, %s247_s18  ;;  %p1882_p7 = scmp.lt.s32.totalorder %s1880_s30, %s1873_s15 }
  0x6f   : > { %p1876_p12 = pnand %p1874_p8, %p2700_p5 }
  0x70   : > { %p1883_p9 = por %p1882_p7, %p1881_p4 }
  0x71   : > { %p1877_p1 = pneg %p1876_p12 }
  0x73   : > { %p1884_p0 = pnand %p1883_p9, %p1877_p1 }
  0x75   : > { %1887 = shalt.err (!%p1884_p0)
}
  0x76   : > { %1700 = dma.hbm_to_vmem [thread:$0]  (!%p2698_p10), %s2657_s5, 16, %s247_s18, [#allocation12]  }
  0x77   : > { %s2336_s20 = scalar_lea.hbm %s2652_s0, %s2260_s9  ;;  %s261_s19 = scalar_lea.vmem [#allocation2], %s2247_s28 }
  0x78   : > { %s268_s29 = sshll.u32 %s261_s19, 4  ;;  %s2701_s13 = sand.u32 1, %s2064_s23   ;;  %s2339_s29 = int_to_ptr.vmem [resolvable:$true] %s268_s29 }
  0x79   : > { %s2343_s25 = scalar_lea.sflag [#allocation3], %s2701_s13  ;;  %s1888_s15 = scalar_lea.hbm %s2336_s20, 96 }
  0x7a   : > { %p1889_p7 = scmp.ne.s32.totalorder %s2336_s20, %s1888_s15  ;;  %p2702_p9 = scmp.ne.s32.totalorder %s2697_s12, 0 }
  0x7b   : > { %s1893_s1 = scalar_lea.hbm %s2652_s0, 192  ;;  %p1894_p13 = scmp.lt.u32.totalorder %s2336_s20, %s2652_s0 }
  0x7c   : > { %p1891_p2 = pnand %p1889_p7, %p2702_p9  ;;  %p1895_p6 = scmp.lt.u32.totalorder %s1893_s1, %s1888_s15 }
  0x7d   : > { %p1897_p3 = scmp.lt.u32.totalorder %s1888_s15, %s2336_s20 }
  0x7e   : > { %p1892_p10 = pneg %p1891_p2  ;;  %p1896_p11 = por %p1895_p6, %p1894_p13 }
  0x80   : > { %p1898_p8 = por %p1897_p3, %p1896_p11 }
  0x82   : > { %p1899_p5 = pnand %p1898_p8, %p1892_p10 }
  0x84   : > { %1902 = shalt.err (!%p1899_p5)
}
  0x85   : > { %s1903_s16 = scalar_lea.vmem %s2339_s29, 96  ;;  %s2085_s19 = smov [#allocation2]  }
  0x86   : > { %p1904_p12 = scmp.ne.s32.totalorder %s2339_s29, %s1903_s16  ;;  %s1908_s13 = sshll.u32 %s2085_s19, 4  ;;  %s1909_s13 = int_to_ptr.vmem [resolvable:$false] %s1908_s13 }
  0x87   : > { %s1910_s18 = scalar_lea.vmem %s1909_s13, 192  ;;  %p1911_p0 = scmp.lt.s32.totalorder %s2339_s29, %s1909_s13 }
  0x88   : > { %p1906_p1 = pnand %p1904_p12, %p2702_p9  ;;  %p1912_p7 = scmp.lt.s32.totalorder %s1910_s18, %s1903_s16 }
  0x8a   : > { %p1907_p4 = pneg %p1906_p1  ;;  %p1913_p2 = por %p1912_p7, %p1911_p0 }
  0x8c   : > { %p1914_p13 = pnand %p1913_p2, %p1907_p4 }
  0x8e   : > { %1917 = shalt.err (!%p1914_p13)
}
  0x8f   : > { %p2703_p10 = scmp.ne.s32.totalorder %s2693_s11, 0  ;;  %s2374_s1 = scalar_lea.hbm %s2654_s2, %s2260_s9 }
  0x90   : > { %s303_s6 = scalar_lea.vmem [#allocation7], %s2247_s28  ;;  %s1918_s16 = scalar_lea.hbm %s2374_s1, 96 }
  0x91   : > { %1704 = dma.hbm_to_vmem [thread:$0]  (!%p2703_p10), %s2336_s20, 96, %s2339_s29, %s2343_s25, %s2082_s14, %s2082_s14, %s2083_s17  }
  0x92   : > { %s310_s21 = sshll.u32 %s303_s6, 4  ;;  %p1919_p6 = scmp.ne.s32.totalorder %s2374_s1, %s1918_s16  ;;  %s2377_s21 = int_to_ptr.vmem [resolvable:$true] %s310_s21 }
  0x93   : > { %s1923_s29 = scalar_lea.hbm %s2654_s2, 192  ;;  %p1924_p8 = scmp.lt.u32.totalorder %s2374_s1, %s2654_s2 }
  0x94   : > { %p1921_p11 = pnand %p1919_p6, %p2702_p9  ;;  %p1925_p5 = scmp.lt.u32.totalorder %s1923_s29, %s1918_s16 }
  0x95   : > { %p1927_p1 = scmp.lt.u32.totalorder %s1918_s16, %s2374_s1 }
  0x96   : > { %p1922_p3 = pneg %p1921_p11  ;;  %p1926_p12 = por %p1925_p5, %p1924_p8 }
  0x98   : > { %p1928_p4 = por %p1927_p1, %p1926_p12 }
  0x9a   : > { %p1929_p0 = pnand %p1928_p4, %p1922_p3 }
  0x9c   : > { %1932 = shalt.err (!%p1929_p0)
}
  0x9d   : > { %s1933_s18 = scalar_lea.vmem %s2377_s21, 96  ;;  %s2086_s15 = smov [#allocation7]  }
  0x9e   : > { %p1934_p7 = scmp.ne.s32.totalorder %s2377_s21, %s1933_s18  ;;  %s1938_s30 = sshll.u32 %s2086_s15, 4  ;;  %s1939_s30 = int_to_ptr.vmem [resolvable:$false] %s1938_s30 }
  0x9f   : > { %s1940_s6 = scalar_lea.vmem %s1939_s30, 192  ;;  %p1941_p6 = scmp.lt.s32.totalorder %s2377_s21, %s1939_s30 }
  0xa0   : > { %p1936_p2 = pnand %p1934_p7, %p2702_p9  ;;  %p1942_p11 = scmp.lt.s32.totalorder %s1940_s6, %s1933_s18 }
  0xa2   : > { %p1937_p13 = pneg %p1936_p2  ;;  %p1943_p8 = por %p1942_p11, %p1941_p6 }
  0xa4   : > { %p1944_p5 = pnand %p1943_p8, %p1937_p13 }
  0xa6   : > { %1947 = shalt.err (!%p1944_p5)
}
  0xa7   : > { %1710 = dma.hbm_to_vmem [thread:$0]  (!%p2703_p10), %s2374_s1, 96, %s2377_s21, %s2279_s4, %s2082_s14, %s2082_s14, %s2083_s17  }
  0xa8   : > { %s2408_s20 = scalar_lea.hbm %s2655_s3, %s2260_s9  ;;  %s324_s29 = scalar_lea.vmem [#allocation8], %s2247_s28 }
  0xa9   : > { %s331_s25 = sshll.u32 %s324_s29, 4  ;;  %s2704_s13 = sand.u32 1, %s2076_s26   ;;  %s2411_s25 = int_to_ptr.vmem [resolvable:$true] %s331_s25 }
  0xaa   : > { %s2415_s18 = scalar_lea.sflag [#allocation9], %s2704_s13  ;;  %s1948_s15 = scalar_lea.hbm %s2408_s20, 96 }
  0xab   : > { %p1949_p3 = scmp.ne.s32.totalorder %s2408_s20, %s1948_s15  ;;  %s1953_s9 = scalar_lea.hbm %s2655_s3, 192 }
  0xac   : > { %p1954_p4 = scmp.lt.u32.totalorder %s2408_s20, %s2655_s3  ;;  %p1955_p0 = scmp.lt.u32.totalorder %s1953_s9, %s1948_s15 }
  0xad   : > { %p1951_p12 = pnand %p1949_p3, %p2702_p9  ;;  %p1957_p2 = scmp.lt.u32.totalorder %s1948_s15, %s2408_s20 }
  0xae   : > { %p1956_p7 = por %p1955_p0, %p1954_p4 }
  0xaf   : > { %p1952_p1 = pneg %p1951_p12 }
  0xb0   : > { %p1958_p13 = por %p1957_p2, %p1956_p7 }
  0xb2   : > { %p1959_p6 = pnand %p1958_p13, %p1952_p1 }
  0xb4   : > { %1962 = shalt.err (!%p1959_p6)
}
  0xb5   : > { %s1963_s28 = scalar_lea.vmem %s2411_s25, 96  ;;  %s2087_s6 = smov [#allocation8]  }
  0xb6   : > { %p1964_p11 = scmp.ne.s32.totalorder %s2411_s25, %s1963_s28  ;;  %s1968_s16 = sshll.u32 %s2087_s6, 4  ;;  %s1969_s16 = int_to_ptr.vmem [resolvable:$false] %s1968_s16 }
  0xb7   : > { %s1970_s19 = scalar_lea.vmem %s1969_s16, 192  ;;  %p1971_p3 = scmp.lt.s32.totalorder %s2411_s25, %s1969_s16 }
  0xb8   : > { %p1966_p8 = pnand %p1964_p11, %p2702_p9  ;;  %p1972_p12 = scmp.lt.s32.totalorder %s1970_s19, %s1963_s28 }
  0xba   : > { %p1967_p5 = pneg %p1966_p8  ;;  %p1973_p4 = por %p1972_p12, %p1971_p3 }
  0xbc   : > { %p1974_p0 = pnand %p1973_p4, %p1967_p5 }
  0xbe   : > { %1977 = shalt.err (!%p1974_p0)
}
  0xbf   : > { %1713 = dma.hbm_to_vmem [thread:$0]  (!%p2703_p10), %s2408_s20, 96, %s2411_s25, %s2415_s18, %s2082_s14, %s2082_s14, %s2083_s17  }
  0xc0   : > { %p2705_p9 = scmp.ne.s32.totalorder %s2687_s10, 0 }
  0xc1   : > { %s2445_s12 = sand.u32 (!%p2705_p9), 1, %s2060_s22   ;;  %p2706_p1 = scmp.ne.s32.totalorder (!%p2705_p9), %s2683_s7, 0 }
  0xc2   : > { %343 = sbr.rel (%p2705_p9) target bundleno = 496 (0x1f0), region = 44  ;;  %s346_s11 = scalar_lea.sflag (!%p2705_p9), [#allocation3], %s2445_s12 }
  0xc3   : > { %s2448_s29 = smul.u32 (!%p2705_p9), 6, %s2445_s12 }
  0xc5   : > { %s2452_s13 = scalar_lea.vmem (!%p2705_p9), [#allocation2], %s2448_s29 }
  0xc9   : > { %2031 = dma.done.wait (%p2706_p1), %s346_s11, 96  }
  0xca   : > { %2033 = vsyncadd (%p2706_p1), %s346_s11, 4294967200  ;;  %s354_s10 = sand.u32 1, %s2161_s27   ;;  %s2460_s17 = scalar_lea.vmem [#allocation5], %s2448_s29 }
  0xcb   : > { %s355_s14 = scalar_lea.sflag [#allocation6], %s354_s10 }
  0xcc   : > { %2035 = dma.done.wait (%p2706_p1), %s355_s14, 192  }
  0xcd   : > { %2037 = vsyncadd (%p2706_p1), %s355_s14, 4294967104  ;;  %s2467_s20 = scalar_lea.vmem [#allocation7], %s2448_s29  ;;  %s373_s25 = scalar_lea.sflag [#allocation9], %s354_s10 }
  0xce   : > { %s376_s18 = scalar_lea.vmem [#allocation8], %s2448_s29 }
  0xcf   : > { %2039 = dma.done.wait (%p2706_p1), %s373_s25, 96  }
  0xd0   : > { %2041 = vsyncadd (%p2706_p1), %s373_s25, 4294967200  ;;  %p2707_p10 = scmp.eq.s32.totalorder %s2161_s27, 0 }
  0xd2   : > { %2043 = dma.done.wait (%p2707_p10), [#allocation9], 2304   ;;  %p2708_p7 = pmov %p2707_p10 }
  0xd4   : > { %2045 = vsyncadd (%p2708_p7), [#allocation9], 4294964992  ;;  %p2709_p2 = pmov %p2708_p7 }
  0xd6   : > { %2047 = dma.done.wait (%p2709_p2), [#allocation12], 16   ;;  %p2710_p13 = pmov %p2709_p2 }
  0xd7   : > { %v2088_v0 = vmov 0.0   ;;  %vm613_vm0 = vsmask.f32 256  ;;  %vm614_vm1 = vsmask.f32 1284  ;;  %vm2089_vm2 = vmmov 0  }
  0xd8   : > { %2049 = vsyncadd (%p2710_p13), [#allocation12], 4294967280  ;;  %1595 = vmatprep.subr.bf16.mxu0 %v2088_v0  ;;  %1603 = vmatprep.subr.bf16.mxu1 %v2088_v0  ;;  %v2090_v1 = vmov 1966171168   ;;  %v454_v3 = vlaneseq  ;;  %vm616_vm4 = vsmask.f32 2312 }
  0xd9   : > { %1599 = vmatprep.mubr.msk.bf16.mxu0 %vm2089_vm2, %v2088_v0  ;;  %v452_v2 = vunpack.c.l.s4 %v2090_v1  ;;  %1607 = vmatprep.mubr.msk.bf16.mxu1 %vm2089_vm2, %v2088_v0  ;;  %vm615_vm3 = vmor %vm613_vm0, %vm614_vm1  ;;  %vm618_vm5 = vsmask.f32 3340  ;;  %vm620_vm7 = vsmask.f32 4368  ;;  %vm622_vm10 = vsmask.f32 5396 }
  0xda   : > { %vm617_vm6 = vmor %vm615_vm3, %vm616_vm4  ;;  %v2488_v5 = vshrl.u32 %v454_v3, 7  ;;  %v1784_v7 = vld [vmem:[#allocation10 + $0x10] sm:$0xff]   ;;  %v1785_v8 = vld [vmem:[#allocation10] sm:$0xff]   ;;  %vm624_vm12 = vsmask.f32 6424  ;;  %vm477_vm14 = vcmask 261120  }
  0xdb   : > { %vm619_vm8 = vmor %vm617_vm6, %vm618_vm5  ;;  %v453_v4 = vunpack.c.0.s8 %v452_v2  ;;  %1596 = vmatpush3.bf16.msra.mxu0 %v1784_v7  ;;  %v1786_v9 = vld [vmem:[#allocation10 + $0x18] sm:$0xff]   ;;  %1604 = vmatpush3.bf16.msra.mxu1 %v1785_v8  ;;  %v1787_v10 = vld [vmem:[#allocation10 + $0x8] sm:$0xff]   ;;  %vm626_vm13 = vsmask.f32 7452  ;;  %s1515_s27 = sshll.u32 %s2445_s12, 2  ;;  %s1567_s7 = sshll.u32 %s2068_s24, 6 }
  0xdc   : > { %vm2490_vm9 = vmor %vm619_vm8, %vm620_vm7  ;;  %1597 = vmatprep.subr.bf16.mxu0 %v2088_v0  ;;  %1605 = vmatprep.subr.bf16.mxu1 %v2088_v0  ;;  %v441_v12 = vld [vmem:[%s2460_s17] sm:$0x1]  ;;  %v442_v13 = vld [vmem:[%s2460_s17 + $0x2] sm:$0x1]  ;;  %s427_s15 = scalar_lea.vmem [#allocation13], %s1515_s27  ;;  %vm1298_vm1 = vcmask 254976  }
  0xdd   : > { %v2496_v11 = vsub.s32 %v453_v4, %v2488_v5  ;;  %v433_v14 = vld [vmem:[%s2452_s13] sm:$0x1]  ;;  %v450_v15 = vcombine.low %v441_v12, %v442_v13  ;;  %v434_v16 = vld [vmem:[%s2452_s13 + $0x2] sm:$0x1]  ;;  %vm623_vm11 = vmor %vm2490_vm9, %vm622_vm10  ;;  %s1317_s4 = sshll.u32 %s427_s15, 4  ;;  %s2715_s21 = sld [smem:[#allocation27_spill]]  ;;  %s2603_s4 = int_to_ptr.vmem [resolvable:$true] %s1317_s4 }
  0xde   : > { %v523_v17 = vcombine.low %v433_v14, %v434_v16  ;;  %v1788_v20 = vld [vmem:[#allocation10 + $0x20] sm:$0xff]   ;;  %v1789_v22 = vld [vmem:[#allocation10 + $0x30] sm:$0xff]   ;;  %vm625_vm15 = vmor %vm623_vm11, %vm624_vm12  ;;  %s1302_s6 = scalar_lea.sflag [#allocation4], %s2445_s12  ;;  %s1978_s16 = scalar_lea.vmem %s2603_s4, 64 }
  0xdf   : > { %1598 = vmatpush3.bf16.msra.mxu0 %v1786_v9  ;;  %1606 = vmatpush3.bf16.msra.mxu1 %v1787_v10  ;;  %v457_v18 = vrot.slane %v450_v15, %v2496_v11  ;;  %v1522_v23 = vld.sshfl [vmem:[%s2452_s13] sm:$0x11 pattern:$0x75316420]  ;;  %vm2516_vm0 = vmor %vm625_vm15, %vm626_vm13  ;;  %v1790_v31 = vld [vmem:[#allocation10 + $0x28] sm:$0xff]   ;;  %p1979_p6 = scmp.ne.s32.totalorder %s2603_s4, %s1978_s16  ;;  %p2717_p11 = scmp.ne.s32.totalorder %s2684_s8, 0 }
  0xe0   : > { %1611 = vmatprep.subr.bf16.mxu0 %v2088_v0  ;;  %v530_v19 = vrot.slane %v523_v17, %v2496_v11  ;;  %1619 = vmatprep.subr.bf16.mxu1 %v2088_v0  ;;  %v1523_v25 = vld.sshfl [vmem:[%s2452_s13 + $0x2] sm:$0x11 pattern:$0x75316420]  ;;  %v604_v26 = vcombine.high %v1522_v23, %v1522_v23  ;;  %v629_v27 = vshrl.u32 %v1522_v23, 16  ;;  %v1792_v52 = vld [vmem:[#allocation10 + $0x40] sm:$0xff]  }
  0xe1   : > { %v464_v21 = vrot.slane %v457_v18, %v2496_v11  ;;  %v612_v28 = vcombine.high %v1523_v25, %v1523_v25  ;;  %v638_v30 = vshrl.u32 %v1523_v25, 16  ;;  %v724_v33 = vld [vmem:[%s2467_s20] sm:$0x1]  ;;  %v725_v34 = vld [vmem:[%s2467_s20 + $0x2] sm:$0x1]  ;;  %v1791_v35 = vld [vmem:[#allocation10 + $0x38] sm:$0xff]   ;;  %p1980_p8 = pnand %p1979_p6, %p2717_p11 }
  0xe2   : > { %v537_v24 = vrot.slane %v530_v19, %v2496_v11  ;;  %v634_v32 = vshll.u32 %v604_v26, 16  ;;  %v733_v37 = vcombine.low %v724_v33, %v725_v34  ;;  %v806_v41 = vld [vmem:[%s376_s18] sm:$0x1]  ;;  %v807_v42 = vld [vmem:[%s376_s18 + $0x2] sm:$0x1]  ;;  %v1794_v57 = vld [vmem:[#allocation10 + $0x48] sm:$0xff]  }
  0xe3   : > { %1600 = vmatmul.mubr.msk.bf16.vlgmr.msra.gmra.mrb[0].mxu0 %vm477_vm14, %v464_v21  ;;  %v643_v36 = vshll.u32 %v612_v28, 16  ;;  %v1793_v44 = vld [vmem:[#allocation10 + $0x50] sm:$0xff]   ;;  %v815_v46 = vcombine.low %v806_v41, %v807_v42  ;;  %v1535_v47 = vld.sshfl [vmem:[%s2467_s20] sm:$0x11 pattern:$0x75316420]  ;;  %s2716_s30 = smov %s2715_s21  ;;  %s2601_s28 = scalar_lea.hbm %s2715_s21, %s1567_s7 }
  0xe4   : > { %1608 = vmatmul.mubr.msk.bf16.vlgmr.msra.gmra.mrb[0].mxu1 %vm477_vm14, %v537_v24  ;;  %1612 = vmatpush3.bf16.msra.mxu0 %v1788_v20  ;;  %v636_v38 = vsel %vm2516_vm0, %v629_v27, %v634_v32  ;;  %v740_v40 = vrot.slane %v733_v37, %v2496_v11  ;;  %v1536_v49 = vld.sshfl [vmem:[%s2467_s20 + $0x2] sm:$0x11 pattern:$0x75316420]  ;;  %v897_v50 = vcombine.high %v1535_v47, %v1535_v47  ;;  %v907_v51 = vshrl.u32 %v1535_v47, 16  ;;  %v1795_v58 = vld [vmem:[#allocation10 + $0x58] sm:$0xff]   ;;  %p1981_p5 = pneg %p1980_p8 }
  0xe5   : > { %1620 = vmatpush3.bf16.msra.mxu1 %v1789_v22  ;;  %1613 = vmatprep.subr.bf16.mxu0 %v2088_v0  ;;  %v2531_v39 = vsel %vm2516_vm0, %v638_v30, %v643_v36  ;;  %v905_v53 = vcombine.high %v1536_v49, %v1536_v49  ;;  %v916_v54 = vshrl.u32 %v1536_v49, 16  ;;  %v822_v59 = vrot.slane %v815_v46, %v2496_v11  ;;  %v1542_v61 = vld [vmem:[%s2452_s13 + $0x2] sm:$0x1]  ;;  %v1543_v63 = vld [vmem:[%s2452_s13 + $0x4] sm:$0x1]  ;;  %v1796_v13 = vld [vmem:[#allocation10 + $0x60] sm:$0xff]  }
  0xe6   : > { %1621 = vmatprep.subr.bf16.mxu1 %v2088_v0  ;;  %1615 = vmatprep.mubr.msk.bf16.mxu0 %vm2089_vm2, %v2088_v0  ;;  %v651_v43 = vcombine.low %v636_v38, %v2531_v39  ;;  %v747_v45 = vrot.slane %v740_v40, %v2496_v11  ;;  %v912_v56 = vshll.u32 %v897_v50, 16  ;;  %v1547_v2 = vld [vmem:[%s2460_s17 + $0x2] sm:$0x1]  ;;  %v1548_v3 = vld [vmem:[%s2460_s17 + $0x4] sm:$0x1]  ;;  %v1012_v9 = vcombine.low %v1542_v61, %v1543_v63  ;;  %v1797_v14 = vld [vmem:[#allocation10 + $0x70] sm:$0xff]  }
  0xe7   : > { %1623 = vmatprep.mubr.msk.bf16.mxu1 %vm2089_vm2, %v2088_v0  ;;  %v921_v60 = vshll.u32 %v905_v53, 16  ;;  %v829_v6 = vrot.slane %v822_v59, %v2496_v11  ;;  %v1555_v7 = vld.sshfl [vmem:[%s2452_s13 + $0x4] sm:$0x11 pattern:$0x75316420]  ;;  %v1094_v10 = vcombine.low %v1547_v2, %v1548_v3  ;;  %v1798_v20 = vld [vmem:[#allocation10 + $0x68] sm:$0xff]  }
  0xe8   : > { %1614 = vmatpush3.bf16.msra.mxu0 %v1790_v31  ;;  %v658_v48 = vrot.slane %v651_v43, %v2496_v11  ;;  %v914_v62 = vsel %vm2516_vm0, %v907_v51, %v912_v56  ;;  %v1184_v12 = vcombine.high %v1555_v7, %v1555_v7  ;;  %v1195_v15 = vshrl.u32 %v1555_v7, 16  ;;  %v1799_v21 = vld [vmem:[#allocation10 + $0x78] sm:$0xff]   ;;  %v1800_v26 = vld [vmem:[#allocation10 + $0x80] sm:$0xff]   ;;  %v1801_v28 = vld [vmem:[#allocation10 + $0x88] sm:$0xff]   ;;  %s2092_s24 = smov [#allocation13]  }
  0xe9   : > { %1622 = vmatpush3.bf16.msra.mxu1 %v1791_v35  ;;  %1627 = vmatprep.subr.bf16.mxu0 %v2088_v0  ;;  %v923_v1 = vsel %vm2516_vm0, %v916_v54, %v921_v60  ;;  %v1019_v18 = vrot.slane %v1012_v9, %v2496_v11  ;;  %v1101_v19 = vrot.slane %v1094_v10, %v2496_v11  ;;  %v1561_v9 = vld [vmem:[#allocation11] ss:$0 sm:$0xff]  ;;  %s1982_s19 = sshll.u32 %s2092_s24, 4  ;;  %s1983_s19 = int_to_ptr.vmem [resolvable:$false] %s1982_s19 }
  0xea   : > { %1635 = vmatprep.subr.bf16.mxu1 %v2088_v0  ;;  %v665_v55 = vrot.slane %v658_v48, %v2496_v11  ;;  %v929_v4 = vcombine.low %v914_v62, %v923_v1  ;;  %v1200_v17 = vshll.u32 %v1184_v12, 16  ;;  %v2091_v62 = vmov 1983009808   ;;  %s1984_s29 = scalar_lea.vmem %s1983_s19, 128  ;;  %p1985_p3 = scmp.lt.s32.totalorder %s2603_s4, %s1983_s19 }
  0xeb   : > { %v1026_v23 = vrot.slane %v1019_v18, %v2496_v11  ;;  %v1108_v24 = vrot.slane %v1101_v19, %v2496_v11  ;;  %v1289_v63 = vunpack.c.l.s4 %v2091_v62  ;;  %p1986_p12 = scmp.lt.s32.totalorder %s1984_s29, %s1978_s16 }
  0xec   : > { %1624 = vmatmul.mubr.msk.bf16.vlgmr.msra.gmra.mrb[4].mxu1 %vm477_vm14, %v747_v45  ;;  %1616 = vmatmul.mubr.msk.bf16.vlgmr.msra.gmra.mrb[4].mxu0 %vm477_vm14, %v665_v55  ;;  %v936_v8 = vrot.slane %v929_v4, %v2496_v11  ;;  %v1202_v22 = vsel %vm2516_vm0, %v1195_v15, %v1200_v17 }
  0xed   : > { %1636 = vmatpush3.bf16.msra.mxu1 %v1793_v44  ;;  %1639 = vmatprep.mubr.msk.bf16.mxu1 %vm2089_vm2, %v2088_v0  ;;  %v1208_v25 = vcombine.low %v2531_v39, %v1202_v22  ;;  %v1290_v7 = vunpack.c.0.s8 %v1289_v63  ;;  %p1987_p4 = por %p1986_p12, %p1985_p3 }
  0xee   : > { %1637 = vmatprep.subr.bf16.mxu1 %v2088_v0  ;;  %1628 = vmatpush3.bf16.msra.mxu0 %v1792_v52  ;;  %v943_v16 = vrot.slane %v936_v8, %v2496_v11 }
  0xef   : > { %1631 = vmatprep.mubr.msk.bf16.mxu0 %vm2089_vm2, %v2088_v0  ;;  %1629 = vmatprep.subr.bf16.mxu0 %v2088_v0  ;;  %v1215_v27 = vrot.slane %v1208_v25, %v2496_v11  ;;  %v1293_v12 = vsub.s32 %v1290_v7, %v2488_v5  ;;  %p1988_p0 = pnand %p1987_p4, %p1981_p5 }
  0xf1   : > { %1638 = vmatpush3.bf16.msra.mxu1 %v1795_v58  ;;  %v1222_v29 = vrot.slane %v1215_v27, %v2496_v11 }
  0xf2   : > { %1651 = vmatprep.subr.bf16.mxu1 %v2088_v0  ;;  %1630 = vmatpush3.bf16.msra.mxu0 %v1794_v57 }
  0xf3   : > { %1643 = vmatprep.subr.bf16.mxu0 %v2088_v0 }
  0xf4   : > { %1640 = vmatmul.mubr.msk.bf16.vlgmr.msra.gmra.mrb[8].mxu1 %vm477_vm14, %v943_v16 }
  0xf5   : > { %1632 = vmatmul.mubr.msk.bf16.vlgmr.msra.gmra.mrb[8].mxu0 %vm477_vm14, %v829_v6  ;;  %1652 = vmatpush3.bf16.msra.mxu1 %v1797_v14 }
  0xf6   : > { %1644 = vmatpush3.bf16.msra.mxu0 %v1796_v13  ;;  %1653 = vmatprep.subr.bf16.mxu1 %v2088_v0 }
  0xf7   : > { %1645 = vmatprep.subr.bf16.mxu0 %v2088_v0  ;;  %1647 = vmatprep.mubr.msk.bf16.mxu0 %vm2089_vm2, %v2088_v0 }
  0xf8   : > { %1655 = vmatprep.mubr.msk.bf16.mxu1 %vm2089_vm2, %v2088_v0 }
  0xf9   : > { %1654 = vmatpush3.bf16.msra.mxu1 %v1799_v21 }
  0xfa   : > { %1646 = vmatpush3.bf16.msra.mxu0 %v1798_v20 }
  0xfb   : > { %1659 = vmatprep.subr.bf16.mxu0 %v2088_v0 }
  0xfc   : > { %1656 = vmatmul.mubr.msk.bf16.vlgmr.msra.gmra.mrb[12].mxu1 %vm477_vm14, %v1108_v24 }
  0xfd   : > { %1648 = vmatmul.mubr.msk.bf16.vlgmr.msra.gmra.mrb[12].mxu0 %vm477_vm14, %v1026_v23 }
  0xfe   : > { %1660 = vmatpush3.bf16.msra.mxu0 %v1800_v26  ;;  %1663 = vmatprep.mubr.msk.bf16.mxu0 %vm2089_vm2, %v2088_v0 }
  0xff   : > { %1661 = vmatprep.subr.bf16.mxu0 %v2088_v0 }
 0x102   : > { %1662 = vmatpush3.bf16.msra.mxu0 %v1801_v28 }
 0x105   : > { %1664 = vmatmul.mubr.msk.bf16.vlgmr.msra.gmra.mrb[16].mxu0 %vm477_vm14, %v1222_v29 }
 0x1b6   : > { %v515_v30 = vpop.f32.mrb[0].mxu0 }
 0x1b7   : > { %v1601_v31 = vpop.f32.mrb[1].mxu0  ;;  %v587_v32 = vpop.f32.mrb[0].mxu1 }
 0x1b8   : > { %v588_v33 = vadd.f32 %v587_v32, %v515_v30  ;;  %v518_v34 = vpop.f32.mrb[2].mxu0  ;;  %v1609_v35 = vpop.f32.mrb[1].mxu1 }
 0x1b9   : > { %v1602_v36 = vpop.f32.mrb[3].mxu0  ;;  %v590_v37 = vpop.f32.mrb[2].mxu1 }
 0x1ba   : > { %v1610_v38 = vpop.f32.mrb[3].mxu1 }
 0x1bf   : > { %v797_v39 = vpop.f32.mrb[4].mxu1  ;;  %v715_v41 = vpop.f32.mrb[4].mxu0 }
 0x1c0   : > { %v1625_v40 = vpop.f32.mrb[5].mxu1  ;;  %v721_v43 = vadd.f32 %v715_v41, %v588_v33  ;;  %v1617_v0 = vpop.f32.mrb[5].mxu0 }
 0x1c1   : > { %v800_v42 = vpop.f32.mrb[6].mxu1  ;;  %v718_v11 = vpop.f32.mrb[6].mxu0 }
 0x1c2   : > { %v1626_v44 = vpop.f32.mrb[7].mxu1  ;;  %v803_v45 = vadd.f32 %v797_v39, %v721_v43  ;;  %v1618_v46 = vpop.f32.mrb[7].mxu0 }
 0x1c7   : > { %v993_v48 = vpop.f32.mrb[8].mxu1 }
 0x1c8   : > { %v879_v47 = vpop.f32.mrb[8].mxu0  ;;  %v1641_v51 = vpop.f32.mrb[9].mxu1 }
 0x1c9   : > { %v885_v49 = vadd.f32 %v879_v47, %v803_v45  ;;  %v1633_v50 = vpop.f32.mrb[9].mxu0  ;;  %v996_v53 = vpop.f32.mrb[10].mxu1 }
 0x1ca   : > { %v882_v52 = vpop.f32.mrb[10].mxu0  ;;  %v1642_v56 = vpop.f32.mrb[11].mxu1 }
 0x1cb   : > { %v999_v54 = vadd.f32 %v993_v48, %v885_v49  ;;  %v1634_v55 = vpop.f32.mrb[11].mxu0 }
 0x1cf   : > { %v1158_v58 = vpop.f32.mrb[12].mxu1 }
 0x1d0   : > { %v1076_v57 = vpop.f32.mrb[12].mxu0  ;;  %v1657_v61 = vpop.f32.mrb[13].mxu1 }
 0x1d1   : > { %v1082_v59 = vadd.f32 %v1076_v57, %v999_v54  ;;  %v1649_v60 = vpop.f32.mrb[13].mxu0  ;;  %v1161_v2 = vpop.f32.mrb[14].mxu1 }
 0x1d2   : > { %v1079_v1 = vpop.f32.mrb[14].mxu0  ;;  %v1658_v6 = vpop.f32.mrb[15].mxu1 }
 0x1d3   : > { %v1164_v3 = vadd.f32 %v1158_v58, %v1082_v59  ;;  %v1650_v4 = vpop.f32.mrb[15].mxu0 }
 0x1d8   : > { %v1272_v8 = vpop.f32.mrb[16].mxu0 }
 0x1d9   : > { %v1278_v10 = vadd.f32 %v1272_v8, %v1164_v3  ;;  %v1665_v13 = vpop.f32.mrb[17].mxu0 }
 0x1da   : > { %v1275_v14 = vpop.f32.mrb[18].mxu0 }
 0x1db   : > { %v1286_v15 = vadd.f32 %v1561_v9, %v1278_v10  ;;  %v1666_v16 = vpop.f32.mrb[19].mxu0 }
 0x1dd   : > { %v1294_v17 = vrot.slane %v1286_v15, %v1293_v12 }
 0x1df   : > { %v1295_v5 = vcombine.high %v1294_v17, %v1294_v17  ;;  %1299 = vst.msk [vmem:[%s427_s15] sm:$0x3] %vm1298_vm1, %v1294_v17 }
 0x1e1   : > { %1300 = vst.msk [vmem:[%s427_s15 + $0x2] sm:$0x3] %vm1298_vm1, %v1295_v5 }
 0x1e2   : > { %1991 = shalt.err (!%p1988_p0)
}
 0x1e3   : > { %s1992_s11 = scalar_lea.hbm %s2601_s28, 64  ;;  %s1996_s14 = scalar_lea.hbm %s2716_s30, 128 }
 0x1e4   : > { %p1993_p9 = scmp.ne.s32.totalorder %s2601_s28, %s1992_s11  ;;  %p1997_p7 = scmp.lt.u32.totalorder %s2601_s28, %s2716_s30 }
 0x1e5   : > { %p1998_p2 = scmp.lt.u32.totalorder %s1996_s14, %s1992_s11  ;;  %p2000_p6 = scmp.lt.u32.totalorder %s1992_s11, %s2601_s28 }
 0x1e6   : > { %p1994_p1 = pnand %p1993_p9, %p2717_p11 }
 0x1e7   : > { %p1999_p13 = por %p1998_p2, %p1997_p7 }
 0x1e8   : > { %p1995_p10 = pneg %p1994_p1 }
 0x1e9   : > { %p2001_p8 = por %p2000_p6, %p1999_p13 }
 0x1eb   : > { %p2002_p5 = pnand %p2001_p8, %p1995_p10 }
 0x1ed   : > { %2005 = shalt.err (!%p2002_p5)
}
 0x1ee   : > { %s2093_s25 = smov 32   ;;  %s2094_s18 = smov 2  }
 0x1ef   : > { %1692 = dma.vmem_to_hbm [thread:$0]  (%p2717_p11), %s2603_s4, 64, %s2601_s28, %s1302_s6, %s2093_s25, %s2093_s25, %s2094_s18  }
 0x1f0 PF: > { %s2718_s27 = sld [smem:[#allocation20_spill]]  ;;  %s2719_s7 = sld [smem:[#allocation22_spill]] }
 0x1f1   : > { %p2721_p12 = scmp.ge.s32.totalorder %s2076_s26, 2 }
 0x1f6   : > { %s1332_s15 = sand.u32 1, %s2718_s27   ;;  %p2720_p3 = scmp.ne.s32.totalorder %s2719_s7, 0 }
 0x1f7   : > { %s1333_s1 = scalar_lea.sflag [#allocation4], %s1332_s15 }
 0x1f8   : > { %p1715_p4 = pnand %p2721_p12, %p2720_p3 }
 0x1fa   : > { %2051 = dma.done.wait (!%p1715_p4), %s1333_s1, 64  }
 0x1fb   : > { %2053 = vsyncadd (!%p1715_p4), %s1333_s1, 4294967232  ;;  %s29_s26 = sadd.s32 1, %s2076_s26   ;;  %s2722_s9 = sld [smem:[#allocation24_spill]] }
 0x1fc   : > { %p26_p0 = scmp.ge.s32.totalorder %s29_s26, 4   ;;  %s2723_s24 = sld [smem:[#allocation21_spill]] }
 0x1fd   : > { %s2724_s25 = sld [smem:[#allocation23_spill]]  ;;  %s2725_s21 = smov %s2060_s22 }
 0x1fe   : > { %s2726_s22 = smov %s2064_s23  ;;  %28 = sbr.rel (!%p26_p0) target bundleno = 15 (0xf), region = 148 }
 0x201   : > { %s2727_s23 = smov %s2722_s9 }
 0x205   :  { %1338 = vsyncpa [#allocation3], 1 }
 0x206   :  { %1340 = vsyncpa [#allocation3 + $0x1], 1 }
 0x207   :  { %1341 = vsyncpa [#allocation6], 1 }
 0x208   :  { %1343 = vsyncpa [#allocation6 + $0x1], 1 }
 0x209   :  { %1344 = vsyncpa [#allocation9], 1 }
 0x20a   :  { %1346 = vsyncpa [#allocation9 + $0x1], 1 }
 0x20b   :  { %1347 = vsyncpa [#allocation12], 1 }
 0x20c   :  { %1348 = vsyncpa [#allocation4], 1 }
 0x20d   :  { %1350 = vsyncpa [#allocation4 + $0x1], 1 }

</bundles_post_ra>
